<compile_context>
chip_gen: v5e
topology: v5e:2x2
jax: 0.10.0
libtpu: 0.0.40
codegen_flags: <defaults>
</compile_context>

<pallas_src>
import jax
import jax.numpy as jnp
from jax.experimental import pallas as pl
from jax.experimental.pallas import tpu as pltpu


def _round_up(n, m):
    return ((n + m - 1) // m) * m


def perceptron_kernel(w_ref, xt_ref, b_ref, o_ref):
    # w_ref : (1, D)  f32 VMEM, resident across all batch tiles
    # xt_ref: (D, TB) f32 VMEM, current batch tile of x^T (lanes = batch)
    # b_ref : (1,)    f32 SMEM, scalar bias
    # o_ref : (1, TB) f32 VMEM, lane-dense output tile
    logits = jnp.dot(w_ref[...], xt_ref[...],
                     preferred_element_type=jnp.float32)
    o_ref[...] = jax.nn.sigmoid(logits + b_ref[0])


def perceptron_forward(x, w, b, *, block_b=1024):
    """sigmoid(x @ w.T + b) for nn.Linear(input_size, 1).

    x: (B, D) f32; w: (1, D) f32 (PyTorch Linear weight layout); b: (1,) f32.
    Returns (B, 1) f32.
    """
    B, D = x.shape
    x = x.astype(jnp.float32)
    w = w.astype(jnp.float32)
    b1 = b.reshape(1).astype(jnp.float32)

    # Lane-dense transposed problem: out_T = sigmoid(w @ x_T + b), shape (1, Bp).
    # Batch tile TB is a multiple of 128 (full-lane stores); pad batch to TB.
    TB = block_b if B >= block_b else _round_up(B, 128)
    Bp = _round_up(B, TB)
    x_t = x.T                                   # (D, B) — layout plumbing in wrapper
    if Bp != B:
        x_t = jnp.pad(x_t, ((0, 0), (0, Bp - B)))

    out_t = pl.pallas_call(
        perceptron_kernel,
        out_shape=jax.ShapeDtypeStruct((1, Bp), jnp.float32),
        grid=(Bp // TB,),
        in_specs=[
            # weight row: constant index_map -> stays resident in VMEM
            pl.BlockSpec((1, D), lambda i: (0, 0)),
            # batch tile of x^T: pipelined / double-buffered over the grid
            pl.BlockSpec((D, TB), lambda i: (0, i)),
            # scalar bias in SMEM (no VMEM tile / DMA for one scalar)
            pl.BlockSpec(memory_space=pltpu.MemorySpace.SMEM),
        ],
        out_specs=pl.BlockSpec((1, TB), lambda i: (0, i)),
        compiler_params=pltpu.CompilerParams(
            # independent batch tiles -> megacore sharding on v7x, no-op on v5e/v6e
            dimension_semantics=("parallel",)),
    )(w, x_t, b1)

    # Back to the PyTorch output layout (B, 1), dropping batch padding.
    return out_t[:, :B].T


if __name__ == "__main__":
    key = jax.random.PRNGKey(0)
    k_x, k_w, k_b = jax.random.split(key, 3)

    batch = 8
    input_size = 32

    x = jax.random.normal(k_x, (batch, input_size), dtype=jnp.float32)
    # Deterministic init mimicking nn.Linear default (uniform in +/- 1/sqrt(fan_in)).
    bound = 1.0 / jnp.sqrt(jnp.float32(input_size))
    w = jax.random.uniform(k_w, (1, input_size), minval=-bound, maxval=bound,
                           dtype=jnp.float32)
    b = jax.random.uniform(k_b, (1,), minval=-bound, maxval=bound,
                           dtype=jnp.float32)

    out = perceptron_forward(x, w, b)
    out = jax.block_until_ready(out)

    # Reference check in plain JAX.
    ref = jax.nn.sigmoid(x @ w.T + b)
    assert out.shape == (batch, 1)
    assert jnp.allclose(out, ref, atol=1e-5, rtol=1e-5)

    print("KERNEL_OK")
</pallas_src>

<mosaic_0001>
module attributes {stable_mosaic.version = 11 : i64} {
  func.func @perceptron_kernel(%arg0: i32, %arg1: memref<1x32xf32, #tpu.memory_space<vmem>>, %arg2: memref<32x128xf32, #tpu.memory_space<vmem>>, %arg3: memref<1xf32, #tpu.memory_space<smem>>, %arg4: memref<1x128xf32, #tpu.memory_space<vmem>>) attributes {dimension_semantics = [#tpu.dimension_semantics<parallel>], iteration_bounds = array<i64: 1>, scalar_prefetch = 0 : i64, scratch_operands = 0 : i64, tpu.core_type = #tpu.core_type<tc>, window_params = [{pipeline_mode = #tpu.pipeline_mode<synchronous>, transform_indices = @transform_0, window_bounds = array<i64: 1, 32>}, {transform_indices = @transform_1, window_bounds = array<i64: 32, 128>}, {transform_indices = @transform_2, window_bounds = array<i64: 1>}, {transform_indices = @transform_3, window_bounds = array<i64: 1, 128>}]} {
    %c0 = arith.constant 0 : index
    %c0_0 = arith.constant 0 : index
    %0 = vector.load %arg1[%c0, %c0_0] : memref<1x32xf32, #tpu.memory_space<vmem>>, vector<1x32xf32>
    %c0_1 = arith.constant 0 : index
    %c0_2 = arith.constant 0 : index
    %1 = vector.load %arg2[%c0_1, %c0_2] : memref<32x128xf32, #tpu.memory_space<vmem>>, vector<32x128xf32>
    %cst = arith.constant dense<0.000000e+00> : vector<1x128xf32>
    %2 = tpu.matmul %0, %1, %cst {dimension_numbers = #tpu.dot_dimension_numbers<[1], [0], [0], [1], [0, 0, 1, 1], [], []>} : vector<1x32xf32>, vector<32x128xf32>, vector<1x128xf32> -> vector<1x128xf32>
    %c0_3 = arith.constant 0 : index
    %3 = memref.load %arg3[%c0_3] : memref<1xf32, #tpu.memory_space<smem>>
    %4 = vector.broadcast %3 : f32 to vector<1x128xf32>
    %5 = arith.addf %2, %4 : vector<1x128xf32>
    %6 = arith.negf %5 : vector<1x128xf32>
    %7 = math.exp %6 : vector<1x128xf32>
    %cst_4 = arith.constant 1.000000e+00 : f32
    %8 = vector.broadcast %cst_4 : f32 to vector<1x128xf32>
    %9 = arith.addf %8, %7 : vector<1x128xf32>
    %10 = arith.divf %8, %9 : vector<1x128xf32>
    %c0_5 = arith.constant 0 : index
    %c0_6 = arith.constant 0 : index
    %11 = vector.load %arg4[%c0_5, %c0_6] : memref<1x128xf32, #tpu.memory_space<vmem>>, vector<1x128xf32>
    tpu.vector_store %arg4[%c0_5, %c0_6], %10 {strides = array<i32>} : memref<1x128xf32, #tpu.memory_space<vmem>>, vector<1x128xf32>,
    return
  }
  func.func @transform_0(%arg0: i32) -> (i32, i32) {
    %c0_i32 = arith.constant 0 : i32
    %c0_i32_0 = arith.constant 0 : i32
    %c0_i32_1 = arith.constant 0 : i32
    return %c0_i32, %c0_i32_0 : i32, i32
  }
  func.func @transform_1(%arg0: i32) -> (i32, i32) {
    %c0_i32 = arith.constant 0 : i32
    %c0_i32_0 = arith.constant 0 : i32
    return %c0_i32, %arg0 : i32, i32
  }
  func.func @transform_2(%arg0: i32) -> i32 {
    %c0_i32 = arith.constant 0 : i32
    %c0_i32_0 = arith.constant 0 : i32
    return %c0_i32 : i32
  }
  func.func @transform_3(%arg0: i32) -> (i32, i32) {
    %c0_i32 = arith.constant 0 : i32
    %c0_i32_0 = arith.constant 0 : i32
    return %c0_i32, %arg0 : i32, i32
  }
}

</mosaic_0001>

<bundles_post_ra>
// kernel: tpu_custom_call.1
= control target key start
LH: loop header
LB: loop body
LE: loop exit
PB: predicated region body
PF: predicated region fallthrough
CT: control target
= control target key end

     0   :  { %9 = vsyncpa [#allocation4], 0  ;;  %s198_s0 = inlined_call_operand.vmem [shape: f32[1,32], index: 0, kind: input, shape index: {}]   ;;  %s199_s1 = inlined_call_operand.hbm [shape: f32[32,128], index: 1, kind: input, shape index: {}]   ;;  %s200_s2 = inlined_call_operand.<no memory space> [shape: f32[1], index: 2, kind: input, shape index: {}]   ;;  %s201_s3 = inlined_call_operand.hbm [shape: f32[1,128], index: 3, kind: output, shape index: {}]  }
   0x1   :  { %10 = vsyncpa [#allocation5], 0  ;;  %s17_s14 = sshll.u32 %s199_s1, 4  ;;  %s162_s15 = smov [#allocation3]   ;;  %s18_s14 = int_to_ptr.hbm [resolvable:$true] %s17_s14 }
   0x2   :  { %s19_s16 = sshll.u32 %s162_s15, 4  ;;  %s163_s17 = smov 128   ;;  %s20_s16 = int_to_ptr.vmem [resolvable:$true] %s19_s16 }
   0x3   :  { %s164_s18 = smov 8  }
   0x4   :  { %25 = dma.hbm_to_vmem [thread:$0]  %s18_s14, 512, %s20_s16, [#allocation4], %s163_s17, %s163_s17, %s164_s18  }
   0x5   :  { %158 = dma.done.wait [#allocation4], 512  }
   0x6   :  { %159 = vsyncadd [#allocation4], 4294966784  ;;  %v36_v0 = vld [vmem:[#allocation3 + $0x18] sm:$0xff]  ;;  %v35_v1 = vld [vmem:[#allocation3 + $0x10] sm:$0xff]  ;;  %vm39_vm0 = vcmask 261120   ;;  %v38_v5 = vstv %s200_s2  ;;  %s90_s2 = sshll.u32 %s201_s3, 4  ;;  %s91_s2 = int_to_ptr.hbm [resolvable:$true] %s90_s2 }
   0x7   :  { %55 = vmatpush.msra.mxu0 %v36_v0  ;;  %v34_v2 = vld [vmem:[#allocation3 + $0x8] sm:$0xff]  ;;  %v33_v3 = vld [vmem:[#allocation3] sm:$0xff] }
   0x8   :  { %v32_v4 = vld [vmem:[%s198_s0] sm:$0x1]  ;;  %s165_s0 = smov [#allocation6]  }
   0x9   :  { %56 = vmatpush.msra.mxu0 %v35_v1  ;;  %s88_s22 = sshll.u32 %s165_s0, 4  ;;  %s89_s22 = int_to_ptr.vmem [resolvable:$true] %s88_s22 }
   0xb   :  { %57 = vmatpush.msra.mxu0 %v34_v2 }
   0xd   :  { %58 = vmatpush.msra.mxu0 %v33_v3 }
   0xe   :  { %100 = vmatmul.msk.f32.vlgmr.msra.gmra.mxu0 %vm39_vm0, %v32_v4 }
  0x8b   :  { %v60_v6 = vpop.f32.mrf.mxu0 }
  0x8c   :  { %v61_v7 = vadd.f32 %v60_v6, %v38_v5 }
  0x8e   :  { %v101_v8 = vmul.f32 -1.442695, %v61_v7 }
  0x90   :  { %106 = vpow2.f32 %v101_v8 }
  0x96   :  { %v107_v9 = vpop.eup %106 }
  0x97   :  { %v66_v10 = vadd.f32 1.0, %v107_v9 }
  0x99   :  { %108 = vrcp.f32 %v66_v10  ;;  %v78_v14 = vand.u32 2147483648, %v66_v10  ;;  %v76_v16 = vand.u32 2147483647, %v66_v10  ;;  %vm72_vm2 = vweird.f32 %v66_v10 }
  0x9b   :  { %v79_v18 = vor.u32 1.1754944e-38, %v78_v14  ;;  %vm77_vm4 = vcmp.eq.f32.partialorder %v76_v16, 8.507059e+37 }
  0x9f   :  { %v109_v11 = vpop.eup %108 }
  0xa0   :  { %v68_v12 = vmul.f32 %v109_v11, %v66_v10  ;;  %vm73_vm1 = vweird.f32 %v109_v11 }
  0xa1   :  { %vm74_vm3 = vmor %vm72_vm2, %vm73_vm1 }
  0xa2   :  { %v69_v13 = vsub.f32 1.0, %v68_v12 }
  0xa4   :  { %v70_v15 = vmul.f32 %v109_v11, %v69_v13 }
  0xa6   :  { %v71_v17 = vadd.f32 %v109_v11, %v70_v15 }
  0xa8   :  { %v75_v19 = vsel %vm74_vm3, %v109_v11, %v71_v17 }
  0xa9   :  { %v80_v20 = vsel %vm77_vm4, %v79_v18, %v75_v19 }
  0xaa   :  { %82 = vst [vmem:[#allocation6] sm:$0x1] %v80_v20 }
  0xab   :  { %93 = dma.vmem_to_hbm [thread:$0]  %s89_s22, 16, %s91_s2, [#allocation5]  }
  0xac   :  { %160 = dma.done.wait [#allocation5], 16  }
  0xad   :  { %161 = vsyncadd [#allocation5], 4294967280 }
  0xae   :  { %98 = vsyncpa [#allocation4], 1 }
  0xaf   :  { %99 = vsyncpa [#allocation5], 1 }

</bundles_post_ra>
